<compile_context>
chip_gen: v5e
topology: v5e:2x2
jax: 0.10.0
libtpu: 0.0.40
codegen_flags: <defaults>
</compile_context>

<pallas_src>
import functools
import numpy as np

import jax
import jax.numpy as jnp
from jax.experimental import pallas as pl
from jax.experimental.pallas import tpu as pltpu

MAX_CHILDREN = 4  # static padding for children per tree node


# --------------------------------------------------------------------------
# Fused Pallas kernel: both trees + classifier in one call
# --------------------------------------------------------------------------
def fused_nli_treelstm_kernel(seqs_ref, w_x4_ref, b_x4_ref, w_h4_ref,
                              w_fc1_ref, b_fc1_ref, w_fc2_ref, b_fc2_ref,
                              out_ref,
                              state_ref, x_proj_ref,
                              *, levels, lroot_slot, rroot_slot,
                              hidden_size, max_children):
    H = hidden_size
    MC = max_children

    # Slot 0 is a permanent all-zero "missing child" state; real node slots
    # are written level by level before they are ever read.
    state_ref[...] = jnp.zeros_like(state_ref)

    # Batched x-path for every node at once (biases of the recurrent path are
    # folded in on the host):
    #   x_proj = seqs @ [W_ioux | W_fx] + [b_ioux + b_iouh | b_fx + b_fh]
    x_proj_ref[...] = (jnp.dot(seqs_ref[...], w_x4_ref[...],
                               preferred_element_type=jnp.float32)
                       + b_x4_ref[...])

    w_h4 = w_h4_ref[...]                          # (H, 4H) = [W_iouh | W_fh]

    # Level-batched recurrent sweep (static Python loop: schedule is baked in).
    for lvl, (start, child_rows) in enumerate(levels):
        L = len(child_rows)
        x_lvl = x_proj_ref[pl.ds(start, L), :]    # (L, 4H), static slice
        x_iou = x_lvl[:, 0:3 * H]                 # includes b_ioux + b_iouh
        x_f = x_lvl[:, 3 * H:4 * H]               # includes b_fx + b_fh

        if lvl == 0:
            # Leaf level: no children -> iou_h = 0, fc_sum = 0.
            iou = x_iou
            fc_sum = None
        else:
            # Gather every child of the level as one packed (L*MC, 2H) block
            # (padded children hit the reserved zero slot 0 -> no masking).
            rows = [state_ref[pl.ds(ci, 1), :]
                    for crow in child_rows for ci in crow]
            child_state = (jnp.concatenate(rows, axis=0)
                           if len(rows) > 1 else rows[0])      # (L*MC, 2H)
            child_c = child_state[:, 0:H]
            child_h = child_state[:, H:2 * H]

            # One lane-dense recurrent matmul for the whole level.
            hp = jnp.dot(child_h, w_h4,
                         preferred_element_type=jnp.float32)   # (L*MC, 4H)

            iou_rows, fc_rows = [], []
            for j in range(L):                    # static per-node reductions
                hp_j = hp[j * MC:(j + 1) * MC, :]               # (MC, 4H)
                # sum over children of child_h @ W_iouh  (linearity)
                iou_rows.append(jnp.sum(hp_j[:, 0:3 * H], axis=0,
                                        keepdims=True))
                f_j = jax.nn.sigmoid(hp_j[:, 3 * H:4 * H] + x_f[j:j + 1, :])
                fc_rows.append(jnp.sum(f_j * child_c[j * MC:(j + 1) * MC, :],
                                       axis=0, keepdims=True))
            iou_h = (jnp.concatenate(iou_rows, axis=0)
                     if L > 1 else iou_rows[0])                 # (L, 3H)
            fc_sum = (jnp.concatenate(fc_rows, axis=0)
                      if L > 1 else fc_rows[0])                 # (L, H)
            iou = x_iou + iou_h

        i = jax.nn.sigmoid(iou[:, 0:H])
        o = jax.nn.sigmoid(iou[:, H:2 * H])
        u = jnp.tanh(iou[:, 2 * H:3 * H])
        c = i * u if fc_sum is None else i * u + fc_sum
        h = o * jnp.tanh(c)

        # Packed c|h row store for the whole level.
        state_ref[pl.ds(start, L), pl.ds(0, H)] = c
        state_ref[pl.ds(start, L), pl.ds(H, H)] = h

    # ---- NLI classifier on the two root *cell* states (matches PyTorch) ----
    lvec = state_ref[pl.ds(lroot_slot, 1), pl.ds(0, H)]        # (1, H)
    rvec = state_ref[pl.ds(rroot_slot, 1), pl.ds(0, H)]        # (1, H)
    mult = lvec * rvec
    absd = jnp.abs(lvec - rvec)

    # Split-weight form of fc1(cat(l, r, l*r, |l-r|)) -> no lane-axis concat.
    w1 = w_fc1_ref[...]                                        # (4H, hidden)
    h1 = (jnp.dot(lvec, w1[0:H, :], preferred_element_type=jnp.float32)
          + jnp.dot(rvec, w1[H:2 * H, :], preferred_element_type=jnp.float32)
          + jnp.dot(mult, w1[2 * H:3 * H, :], preferred_element_type=jnp.float32)
          + jnp.dot(absd, w1[3 * H:4 * H, :], preferred_element_type=jnp.float32)
          + b_fc1_ref[...])
    h1 = jnp.maximum(h1, 0.0)

    logits = (jnp.dot(h1, w_fc2_ref[...], preferred_element_type=jnp.float32)
              + b_fc2_ref[...])                                # (1, C)
    m = jnp.max(logits, axis=1, keepdims=True)
    shifted = logits - m
    lse = jnp.log(jnp.sum(jnp.exp(shifted), axis=1, keepdims=True))
    out_ref[...] = shifted - lse                               # log_softmax


# --------------------------------------------------------------------------
# Host-side static schedule (tree structure is Python data -> trace-time const)
# --------------------------------------------------------------------------
class Tree:
    def __init__(self, idx, children=()):
        self.idx = idx
        self.children = list(children)
        self.num_children = len(self.children)


def build_schedule(ltree, rtree, n_left_tokens, max_children=MAX_CHILDREN):
    """Level-ordered schedule over BOTH trees.

    Slot 0 is the zero slot; slots 1..n_nodes are assigned level by level
    (level = distance from the leaves), so children always live in lower
    levels and nodes of a level get consecutive slots.
    """
    nodes = []   # dicts: seq (row in concatenated seqs), children, depth

    def visit(node, base):
        cids = [visit(ch, base) for ch in node.children]
        if len(cids) > max_children:
            raise ValueError("node has more children than MAX_CHILDREN")
        depth = 1 + max((nodes[c]["depth"] for c in cids), default=-1)
        nodes.append({"seq": base + node.idx, "children": cids, "depth": depth})
        return len(nodes) - 1

    lroot = visit(ltree, 0)
    rroot = visit(rtree, n_left_tokens)

    max_depth = max(n["depth"] for n in nodes)
    slot_of = [None] * len(nodes)
    seq_perm = []
    levels = []
    next_slot = 1
    for d in range(max_depth + 1):
        lvl_ids = [i for i, n in enumerate(nodes) if n["depth"] == d]
        start = next_slot
        child_rows = []
        for i in lvl_ids:
            slot_of[i] = next_slot
            seq_perm.append(nodes[i]["seq"])
            cs = [slot_of[c] for c in nodes[i]["children"]]
            child_rows.append(tuple(cs + [0] * (max_children - len(cs))))
            next_slot += 1
        levels.append((start, tuple(child_rows)))

    n_nodes = len(nodes)
    n_slots = ((n_nodes + 1 + 7) // 8) * 8        # ceil to multiple of 8
    return (tuple(levels), tuple(seq_perm), n_nodes, n_slots,
            slot_of[lroot], slot_of[rroot], max_children)


@functools.lru_cache(maxsize=None)
def _build_jitted_forward(schedule_key):
    (levels, seq_perm_t, n_nodes, n_slots,
     lroot_slot, rroot_slot, max_children) = schedule_key
    seq_perm_np = np.asarray(seq_perm_t, np.int32)             # (n_nodes,)

    def run(ltokens, rtokens, ledges, redges, params):
        tp = params["treelstm"]
        cp = params["classifier"]
        H = int(tp["w_fh"].shape[1])
        num_classes = int(cp["w_fc2"].shape[1])

        # embedding gathers + seqs = cat(word_emb, edge_emb) (XLA glue)
        lseqs = jnp.concatenate([params["embs"][ltokens],
                                 params["edge_embs"][ledges]], axis=1)
        rseqs = jnp.concatenate([params["embs"][rtokens],
                                 params["edge_embs"][redges]], axis=1)
        all_seqs = jnp.concatenate([lseqs, rseqs], axis=0)      # (n_nodes, D)
        seqs_ord = all_seqs[seq_perm_np].astype(jnp.float32)    # level order
        D = seqs_ord.shape[1]
        seqs_slots = jnp.zeros((n_slots, D), jnp.float32)
        seqs_slots = seqs_slots.at[1:1 + n_nodes].set(seqs_ord)  # row 0 = zeros

        # fuse the two x-path weights and fold in the recurrent biases
        w_x4 = jnp.concatenate([tp["w_ioux"], tp["w_fx"]], axis=1)     # (D, 4H)
        b_x4 = jnp.concatenate([tp["b_ioux"] + tp["b_iouh"],
                                tp["b_fx"] + tp["b_fh"]], axis=1)      # (1, 4H)
        # fuse the two recurrent weights into one lane-dense operand
        w_h4 = jnp.concatenate([tp["w_iouh"], tp["w_fh"]], axis=1)     # (H, 4H)

        kernel = functools.partial(
            fused_nli_treelstm_kernel,
            levels=levels, lroot_slot=lroot_slot, rroot_slot=rroot_slot,
            hidden_size=H, max_children=max_children)

        vmem = pl.BlockSpec(memory_space=pltpu.MemorySpace.VMEM)
        return pl.pallas_call(
            kernel,
            out_shape=jax.ShapeDtypeStruct((1, num_classes), jnp.float32),
            in_specs=[vmem] * 8,
            out_specs=vmem,
            scratch_shapes=[
                pltpu.VMEM((n_slots, 2 * H), jnp.float32),      # packed c|h
                pltpu.VMEM((n_slots, 4 * H), jnp.float32),      # x_proj
            ],
        )(seqs_slots, w_x4, b_x4, w_h4,
          cp["w_fc1"], cp["b_fc1"], cp["w_fc2"], cp["b_fc2"])

    return jax.jit(run)


def nli_treelstm_forward(ltree, ltokens, rtree, rtokens, ledges, redges, params):
    key = build_schedule(ltree, rtree, int(ltokens.shape[0]))
    fwd = _build_jitted_forward(key)
    return fwd(ltokens, rtokens, ledges, redges, params)


# --------------------------------------------------------------------------
# Pure-JAX reference (mirrors the PyTorch math, no padding) for validation
# --------------------------------------------------------------------------
def ref_node_forward(seqs, child_c, child_h, p):
    H = p["w_fh"].shape[1]
    child_h_sum = jnp.sum(child_h, axis=0, keepdims=True)
    iou = (seqs @ p["w_ioux"] + p["b_ioux"]
           + child_h_sum @ p["w_iouh"] + p["b_iouh"])
    i = jax.nn.sigmoid(iou[:, :H])
    o = jax.nn.sigmoid(iou[:, H:2 * H])
    u = jnp.tanh(iou[:, 2 * H:])
    f = jax.nn.sigmoid(child_h @ p["w_fh"] + p["b_fh"]
                       + seqs @ p["w_fx"] + p["b_fx"])
    c = i * u + jnp.sum(f * child_c, axis=0, keepdims=True)
    h = o * jnp.tanh(c)
    return c, h


def ref_tree(tree, inputs, edge_inputs, p, H):
    states = [ref_tree(c, inputs, edge_inputs, p, H) for c in tree.children]
    if not states:
        cc = jnp.zeros((1, H), jnp.float32)
        hh = jnp.zeros((1, H), jnp.float32)
    else:
        cc = jnp.concatenate([s[0] for s in states], axis=0)
        hh = jnp.concatenate([s[1] for s in states], axis=0)
    seqs = jnp.concatenate([inputs[tree.idx], edge_inputs[tree.idx]],
                           axis=0)[None, :]
    return ref_node_forward(seqs, cc, hh, p)


def ref_forward(ltree, ltokens, rtree, rtokens, ledges, redges, params):
    linputs = params["embs"][ltokens]
    rinputs = params["embs"][rtokens]
    ledge_in = params["edge_embs"][ledges]
    redge_in = params["edge_embs"][redges]
    H = params["treelstm"]["w_fh"].shape[1]
    lc, _ = ref_tree(ltree, linputs, ledge_in, params["treelstm"], H)
    rc, _ = ref_tree(rtree, rinputs, redge_in, params["treelstm"], H)
    cp = params["classifier"]
    vec = jnp.concatenate([lc, rc, lc * rc, jnp.abs(lc - rc)], axis=1)
    h1 = jax.nn.relu(vec @ cp["w_fc1"] + cp["b_fc1"])
    logits = h1 @ cp["w_fc2"] + cp["b_fc2"]
    return jax.nn.log_softmax(logits, axis=1)


# --------------------------------------------------------------------------
def linear_params(key, in_f, out_f, bias=True):
    k1, k2 = jax.random.split(key)
    bound = 1.0 / np.sqrt(in_f)
    w = jax.random.uniform(k1, (in_f, out_f), jnp.float32, -bound, bound)
    b = (jax.random.uniform(k2, (1, out_f), jnp.float32, -bound, bound)
         if bias else jnp.zeros((1, out_f), jnp.float32))
    return w, b


if __name__ == "__main__":
    key = jax.random.PRNGKey(0)

    # small shapes consistent with the module
    vocab_size = 50
    emb_size = 16
    mem_size = 32            # TreeLSTM hidden size H
    hidden_size = 32         # classifier hidden size
    num_classes = 3
    edge_vocab_size = 20
    edge_size = 20
    D = emb_size + edge_size

    keys = jax.random.split(key, 12)

    # embeddings (padding_idx=0 -> zero row)
    embs = jax.random.normal(keys[0], (vocab_size, emb_size), jnp.float32)
    embs = embs.at[0].set(0.0)
    edge_embs = jax.random.normal(keys[1], (edge_vocab_size, edge_size),
                                  jnp.float32)

    # AddTreeLSTM params (stored transposed vs PyTorch: y = x @ W + b)
    w_ioux, b_ioux = linear_params(keys[2], D, 3 * mem_size)
    w_iouh, b_iouh = linear_params(keys[3], mem_size, 3 * mem_size)
    w_fx, b_fx = linear_params(keys[4], D, mem_size)
    w_fh, b_fh = linear_params(keys[5], mem_size, mem_size)

    # NLIClassifier params
    w_fc1, b_fc1 = linear_params(keys[6], 4 * mem_size, hidden_size)
    w_fc2, b_fc2 = linear_params(keys[7], hidden_size, num_classes)

    params = {
        "embs": embs,
        "edge_embs": edge_embs,
        "treelstm": {
            "w_ioux": w_ioux, "b_ioux": b_ioux,
            "w_iouh": w_iouh, "b_iouh": b_iouh,
            "w_fx": w_fx, "b_fx": b_fx,
            "w_fh": w_fh, "b_fh": b_fh,
        },
        "classifier": {
            "w_fc1": w_fc1, "b_fc1": b_fc1,
            "w_fc2": w_fc2, "b_fc2": b_fc2,
        },
    }

    # left tree: 5 nodes; right tree: 4 nodes
    #   left : root(0) -> [n1 -> [n3, n4], n2]
    #   right: root(0) -> [n1, n2 -> [n3]]
    ltree = Tree(0, [Tree(1, [Tree(3), Tree(4)]), Tree(2)])
    rtree = Tree(0, [Tree(1), Tree(2, [Tree(3)])])

    ltokens = jax.random.randint(keys[8], (5,), 1, vocab_size, jnp.int32)
    rtokens = jax.random.randint(keys[9], (4,), 1, vocab_size, jnp.int32)
    ledges = jax.random.randint(keys[10], (5,), 0, edge_vocab_size, jnp.int32)
    redges = jax.random.randint(keys[11], (4,), 0, edge_vocab_size, jnp.int32)

    out = nli_treelstm_forward(ltree, ltokens, rtree, rtokens,
                               ledges, redges, params)
    out = jax.block_until_ready(out)

    # sanity check against pure-JAX reference
    ref = jax.block_until_ready(
        ref_forward(ltree, ltokens, rtree, rtokens, ledges, redges, params))
    np.testing.assert_allclose(np.asarray(out), np.asarray(ref),
                               rtol=2e-4, atol=2e-4)

    print("KERNEL_OK")
</pallas_src>

<mosaic_0001>
module attributes {stable_mosaic.version = 11 : i64} {
  func.func @fused_nli_treelstm_kernel(%arg0: memref<16x36xf32, #tpu.memory_space<vmem>>, %arg1: memref<36x128xf32, #tpu.memory_space<vmem>>, %arg2: memref<1x128xf32, #tpu.memory_space<vmem>>, %arg3: memref<32x128xf32, #tpu.memory_space<vmem>>, %arg4: memref<128x32xf32, #tpu.memory_space<vmem>>, %arg5: memref<1x32xf32, #tpu.memory_space<vmem>>, %arg6: memref<32x3xf32, #tpu.memory_space<vmem>>, %arg7: memref<1x3xf32, #tpu.memory_space<vmem>>, %arg8: memref<1x3xf32, #tpu.memory_space<vmem>>, %arg9: memref<16x64xf32, #tpu.memory_space<vmem>>, %arg10: memref<16x128xf32, #tpu.memory_space<vmem>>) attributes {dimension_semantics = [], scalar_prefetch = 0 : i64, scratch_operands = 2 : i64, tpu.core_type = #tpu.core_type<tc>} {
    %cst = arith.constant 0.000000e+00 : f32
    %0 = vector.broadcast %cst : f32 to vector<16x64xf32>
    %c0 = arith.constant 0 : index
    %c0_0 = arith.constant 0 : index
    %1 = vector.load %arg9[%c0, %c0_0] : memref<16x64xf32, #tpu.memory_space<vmem>>, vector<16x64xf32>
    tpu.vector_store %arg9[%c0, %c0_0], %0 {strides = array<i32>} : memref<16x64xf32, #tpu.memory_space<vmem>>, vector<16x64xf32>,
    %c0_1 = arith.constant 0 : index
    %c0_2 = arith.constant 0 : index
    %2 = vector.load %arg0[%c0_1, %c0_2] : memref<16x36xf32, #tpu.memory_space<vmem>>, vector<16x36xf32>
    %c0_3 = arith.constant 0 : index
    %c0_4 = arith.constant 0 : index
    %3 = vector.load %arg1[%c0_3, %c0_4] : memref<36x128xf32, #tpu.memory_space<vmem>>, vector<36x128xf32>
    %cst_5 = arith.constant dense<0.000000e+00> : vector<16x128xf32>
    %4 = tpu.matmul %2, %3, %cst_5 {dimension_numbers = #tpu.dot_dimension_numbers<[1], [0], [0], [1], [0, 0, 1, 1], [], []>} : vector<16x36xf32>, vector<36x128xf32>, vector<16x128xf32> -> vector<16x128xf32>
    %c0_6 = arith.constant 0 : index
    %c0_7 = arith.constant 0 : index
    %5 = vector.load %arg2[%c0_6, %c0_7] : memref<1x128xf32, #tpu.memory_space<vmem>>, vector<1x128xf32>
    %6 = vector.broadcast %5 : vector<1x128xf32> to vector<16x128xf32>
    %7 = arith.addf %4, %6 : vector<16x128xf32>
    %c0_8 = arith.constant 0 : index
    %c0_9 = arith.constant 0 : index
    %8 = vector.load %arg10[%c0_8, %c0_9] : memref<16x128xf32, #tpu.memory_space<vmem>>, vector<16x128xf32>
    tpu.vector_store %arg10[%c0_8, %c0_9], %7 {strides = array<i32>} : memref<16x128xf32, #tpu.memory_space<vmem>>, vector<16x128xf32>,
    %c0_10 = arith.constant 0 : index
    %c0_11 = arith.constant 0 : index
    %9 = vector.load %arg3[%c0_10, %c0_11] : memref<32x128xf32, #tpu.memory_space<vmem>>, vector<32x128xf32>
    %c1 = arith.constant 1 : index
    %c0_12 = arith.constant 0 : index
    %10 = vector.load %arg10[%c1, %c0_12] : memref<16x128xf32, #tpu.memory_space<vmem>>, vector<5x128xf32>
    %11 = vector.extract_strided_slice %10 {offsets = [0, 0], sizes = [5, 96], strides = [1, 1]} : vector<5x128xf32> to vector<5x96xf32>
    %12 = vector.extract_strided_slice %11 {offsets = [0, 0], sizes = [5, 32], strides = [1, 1]} : vector<5x96xf32> to vector<5x32xf32>
    %13 = arith.negf %12 : vector<5x32xf32>
    %14 = math.exp %13 : vector<5x32xf32>
    %cst_13 = arith.constant 1.000000e+00 : f32
    %15 = vector.broadcast %cst_13 : f32 to vector<5x32xf32>
    %16 = arith.addf %15, %14 : vector<5x32xf32>
    %17 = arith.divf %15, %16 : vector<5x32xf32>
    %18 = vector.extract_strided_slice %11 {offsets = [0, 32], sizes = [5, 32], strides = [1, 1]} : vector<5x96xf32> to vector<5x32xf32>
    %19 = arith.negf %18 : vector<5x32xf32>
    %20 = math.exp %19 : vector<5x32xf32>
    %cst_14 = arith.constant 1.000000e+00 : f32
    %21 = vector.broadcast %cst_14 : f32 to vector<5x32xf32>
    %22 = arith.addf %21, %20 : vector<5x32xf32>
    %23 = arith.divf %21, %22 : vector<5x32xf32>
    %24 = vector.extract_strided_slice %11 {offsets = [0, 64], sizes = [5, 32], strides = [1, 1]} : vector<5x96xf32> to vector<5x32xf32>
    %25 = math.tanh %24 : vector<5x32xf32>
    %26 = arith.mulf %17, %25 : vector<5x32xf32>
    %27 = math.tanh %26 : vector<5x32xf32>
    %28 = arith.mulf %23, %27 : vector<5x32xf32>
    %c1_15 = arith.constant 1 : index
    %c0_16 = arith.constant 0 : index
    %29 = vector.load %arg9[%c1_15, %c0_16] : memref<16x64xf32, #tpu.memory_space<vmem>>, vector<5x32xf32>
    tpu.vector_store %arg9[%c1_15, %c0_16], %26 {strides = array<i32>} : memref<16x64xf32, #tpu.memory_space<vmem>>, vector<5x32xf32>,
    %c1_17 = arith.constant 1 : index
    %c32 = arith.constant 32 : index
    %30 = vector.load %arg9[%c1_17, %c32] : memref<16x64xf32, #tpu.memory_space<vmem>>, vector<5x32xf32>
    tpu.vector_store %arg9[%c1_17, %c32], %28 {strides = array<i32>} : memref<16x64xf32, #tpu.memory_space<vmem>>, vector<5x32xf32>,
    %c6 = arith.constant 6 : index
    %c0_18 = arith.constant 0 : index
    %31 = vector.load %arg10[%c6, %c0_18] : memref<16x128xf32, #tpu.memory_space<vmem>>, vector<2x128xf32>
    %32 = vector.extract_strided_slice %31 {offsets = [0, 0], sizes = [2, 96], strides = [1, 1]} : vector<2x128xf32> to vector<2x96xf32>
    %33 = vector.extract_strided_slice %31 {offsets = [0, 96], sizes = [2, 32], strides = [1, 1]} : vector<2x128xf32> to vector<2x32xf32>
    %c1_19 = arith.constant 1 : index
    %c0_20 = arith.constant 0 : index
    %34 = vector.load %arg9[%c1_19, %c0_20] : memref<16x64xf32, #tpu.memory_space<vmem>>, vector<1x64xf32>
    %c2 = arith.constant 2 : index
    %c0_21 = arith.constant 0 : index
    %35 = vector.load %arg9[%c2, %c0_21] : memref<16x64xf32, #tpu.memory_space<vmem>>, vector<1x64xf32>
    %c0_22 = arith.constant 0 : index
    %c0_23 = arith.constant 0 : index
    %36 = vector.load %arg9[%c0_22, %c0_23] : memref<16x64xf32, #tpu.memory_space<vmem>>, vector<1x64xf32>
    %c0_24 = arith.constant 0 : index
    %c0_25 = arith.constant 0 : index
    %37 = vector.load %arg9[%c0_24, %c0_25] : memref<16x64xf32, #tpu.memory_space<vmem>>, vector<1x64xf32>
    %c5 = arith.constant 5 : index
    %c0_26 = arith.constant 0 : index
    %38 = vector.load %arg9[%c5, %c0_26] : memref<16x64xf32, #tpu.memory_space<vmem>>, vector<1x64xf32>
    %c0_27 = arith.constant 0 : index
    %c0_28 = arith.constant 0 : index
    %39 = vector.load %arg9[%c0_27, %c0_28] : memref<16x64xf32, #tpu.memory_space<vmem>>, vector<1x64xf32>
    %c0_29 = arith.constant 0 : index
    %c0_30 = arith.constant 0 : index
    %40 = vector.load %arg9[%c0_29, %c0_30] : memref<16x64xf32, #tpu.memory_space<vmem>>, vector<1x64xf32>
    %c0_31 = arith.constant 0 : index
    %c0_32 = arith.constant 0 : index
    %41 = vector.load %arg9[%c0_31, %c0_32] : memref<16x64xf32, #tpu.memory_space<vmem>>, vector<1x64xf32>
    %42 = tpu.concatenate %34, %35, %36, %37, %38, %39, %40, %41 in 0 : vector<1x64xf32>, vector<1x64xf32>, vector<1x64xf32>, vector<1x64xf32>, vector<1x64xf32>, vector<1x64xf32>, vector<1x64xf32>, vector<1x64xf32> -> vector<8x64xf32>
    %43 = vector.extract_strided_slice %42 {offsets = [0, 0], sizes = [8, 32], strides = [1, 1]} : vector<8x64xf32> to vector<8x32xf32>
    %44 = vector.extract_strided_slice %42 {offsets = [0, 32], sizes = [8, 32], strides = [1, 1]} : vector<8x64xf32> to vector<8x32xf32>
    %cst_33 = arith.constant dense<0.000000e+00> : vector<8x128xf32>
    %45 = tpu.matmul %44, %9, %cst_33 {dimension_numbers = #tpu.dot_dimension_numbers<[1], [0], [0], [1], [0, 0, 1, 1], [], []>} : vector<8x32xf32>, vector<32x128xf32>, vector<8x128xf32> -> vector<8x128xf32>
    %46 = vector.extract_strided_slice %45 {offsets = [0, 0], sizes = [4, 128], strides = [1, 1]} : vector<8x128xf32> to vector<4x128xf32>
    %47 = vector.extract_strided_slice %46 {offsets = [0, 0], sizes = [4, 96], strides = [1, 1]} : vector<4x128xf32> to vector<4x96xf32>
    %cst_34 = arith.constant dense<0.000000e+00> : vector<96xf32>
    %48 = vector.multi_reduction <add>, %47, %cst_34 [0] : vector<4x96xf32> to vector<96xf32>
    %49 = vector.shape_cast %48 : vector<96xf32> to vector<1x96xf32>
    %50 = vector.extract_strided_slice %46 {offsets = [0, 96], sizes = [4, 32], strides = [1, 1]} : vector<4x128xf32> to vector<4x32xf32>
    %51 = vector.extract_strided_slice %33 {offsets = [0, 0], sizes = [1, 32], strides = [1, 1]} : vector<2x32xf32> to vector<1x32xf32>
    %52 = vector.broadcast %51 : vector<1x32xf32> to vector<4x32xf32>
    %53 = arith.addf %50, %52 : vector<4x32xf32>
    %54 = arith.negf %53 : vector<4x32xf32>
    %55 = math.exp %54 : vector<4x32xf32>
    %cst_35 = arith.constant 1.000000e+00 : f32
    %56 = vector.broadcast %cst_35 : f32 to vector<4x32xf32>
    %57 = arith.addf %56, %55 : vector<4x32xf32>
    %58 = arith.divf %56, %57 : vector<4x32xf32>
    %59 = vector.extract_strided_slice %43 {offsets = [0, 0], sizes = [4, 32], strides = [1, 1]} : vector<8x32xf32> to vector<4x32xf32>
    %60 = arith.mulf %58, %59 : vector<4x32xf32>
    %cst_36 = arith.constant dense<0.000000e+00> : vector<32xf32>
    %61 = vector.multi_reduction <add>, %60, %cst_36 [0] : vector<4x32xf32> to vector<32xf32>
    %62 = vector.shape_cast %61 : vector<32xf32> to vector<1x32xf32>
    %63 = vector.extract_strided_slice %45 {offsets = [4, 0], sizes = [4, 128], strides = [1, 1]} : vector<8x128xf32> to vector<4x128xf32>
    %64 = vector.extract_strided_slice %63 {offsets = [0, 0], sizes = [4, 96], strides = [1, 1]} : vector<4x128xf32> to vector<4x96xf32>
    %cst_37 = arith.constant dense<0.000000e+00> : vector<96xf32>
    %65 = vector.multi_reduction <add>, %64, %cst_37 [0] : vector<4x96xf32> to vector<96xf32>
    %66 = vector.shape_cast %65 : vector<96xf32> to vector<1x96xf32>
    %67 = vector.extract_strided_slice %63 {offsets = [0, 96], sizes = [4, 32], strides = [1, 1]} : vector<4x128xf32> to vector<4x32xf32>
    %68 = vector.extract_strided_slice %33 {offsets = [1, 0], sizes = [1, 32], strides = [1, 1]} : vector<2x32xf32> to vector<1x32xf32>
    %69 = vector.broadcast %68 : vector<1x32xf32> to vector<4x32xf32>
    %70 = arith.addf %67, %69 : vector<4x32xf32>
    %71 = arith.negf %70 : vector<4x32xf32>
    %72 = math.exp %71 : vector<4x32xf32>
    %cst_38 = arith.constant 1.000000e+00 : f32
    %73 = vector.broadcast %cst_38 : f32 to vector<4x32xf32>
    %74 = arith.addf %73, %72 : vector<4x32xf32>
    %75 = arith.divf %73, %74 : vector<4x32xf32>
    %76 = vector.extract_strided_slice %43 {offsets = [4, 0], sizes = [4, 32], strides = [1, 1]} : vector<8x32xf32> to vector<4x32xf32>
    %77 = arith.mulf %75, %76 : vector<4x32xf32>
    %cst_39 = arith.constant dense<0.000000e+00> : vector<32xf32>
    %78 = vector.multi_reduction <add>, %77, %cst_39 [0] : vector<4x32xf32> to vector<32xf32>
    %79 = vector.shape_cast %78 : vector<32xf32> to vector<1x32xf32>
    %80 = tpu.concatenate %49, %66 in 0 : vector<1x96xf32>, vector<1x96xf32> -> vector<2x96xf32>
    %81 = tpu.concatenate %62, %79 in 0 : vector<1x32xf32>, vector<1x32xf32> -> vector<2x32xf32>
    %82 = arith.addf %32, %80 : vector<2x96xf32>
    %83 = vector.extract_strided_slice %82 {offsets = [0, 0], sizes = [2, 32], strides = [1, 1]} : vector<2x96xf32> to vector<2x32xf32>
    %84 = arith.negf %83 : vector<2x32xf32>
    %85 = math.exp %84 : vector<2x32xf32>
    %cst_40 = arith.constant 1.000000e+00 : f32
    %86 = vector.broadcast %cst_40 : f32 to vector<2x32xf32>
    %87 = arith.addf %86, %85 : vector<2x32xf32>
    %88 = arith.divf %86, %87 : vector<2x32xf32>
    %89 = vector.extract_strided_slice %82 {offsets = [0, 32], sizes = [2, 32], strides = [1, 1]} : vector<2x96xf32> to vector<2x32xf32>
    %90 = arith.negf %89 : vector<2x32xf32>
    %91 = math.exp %90 : vector<2x32xf32>
    %cst_41 = arith.constant 1.000000e+00 : f32
    %92 = vector.broadcast %cst_41 : f32 to vector<2x32xf32>
    %93 = arith.addf %92, %91 : vector<2x32xf32>
    %94 = arith.divf %92, %93 : vector<2x32xf32>
    %95 = vector.extract_strided_slice %82 {offsets = [0, 64], sizes = [2, 32], strides = [1, 1]} : vector<2x96xf32> to vector<2x32xf32>
    %96 = math.tanh %95 : vector<2x32xf32>
    %97 = arith.mulf %88, %96 : vector<2x32xf32>
    %98 = arith.addf %97, %81 : vector<2x32xf32>
    %99 = math.tanh %98 : vector<2x32xf32>
    %100 = arith.mulf %94, %99 : vector<2x32xf32>
    %c6_42 = arith.constant 6 : index
    %c0_43 = arith.constant 0 : index
    %101 = vector.load %arg9[%c6_42, %c0_43] : memref<16x64xf32, #tpu.memory_space<vmem>>, vector<2x32xf32>
    tpu.vector_store %arg9[%c6_42, %c0_43], %98 {strides = array<i32>} : memref<16x64xf32, #tpu.memory_space<vmem>>, vector<2x32xf32>,
    %c6_44 = arith.constant 6 : index
    %c32_45 = arith.constant 32 : index
    %102 = vector.load %arg9[%c6_44, %c32_45] : memref<16x64xf32, #tpu.memory_space<vmem>>, vector<2x32xf32>
    tpu.vector_store %arg9[%c6_44, %c32_45], %100 {strides = array<i32>} : memref<16x64xf32, #tpu.memory_space<vmem>>, vector<2x32xf32>,
    %c8 = arith.constant 8 : index
    %c0_46 = arith.constant 0 : index
    %103 = vector.load %arg10[%c8, %c0_46] : memref<16x128xf32, #tpu.memory_space<vmem>>, vector<2x128xf32>
    %104 = vector.extract_strided_slice %103 {offsets = [0, 0], sizes = [2, 96], strides = [1, 1]} : vector<2x128xf32> to vector<2x96xf32>
    %105 = vector.extract_strided_slice %103 {offsets = [0, 96], sizes = [2, 32], strides = [1, 1]} : vector<2x128xf32> to vector<2x32xf32>
    %c6_47 = arith.constant 6 : index
    %c0_48 = arith.constant 0 : index
    %106 = vector.load %arg9[%c6_47, %c0_48] : memref<16x64xf32, #tpu.memory_space<vmem>>, vector<1x64xf32>
    %c3 = arith.constant 3 : index
    %c0_49 = arith.constant 0 : index
    %107 = vector.load %arg9[%c3, %c0_49] : memref<16x64xf32, #tpu.memory_space<vmem>>, vector<1x64xf32>
    %c0_50 = arith.constant 0 : index
    %c0_51 = arith.constant 0 : index
    %108 = vector.load %arg9[%c0_50, %c0_51] : memref<16x64xf32, #tpu.memory_space<vmem>>, vector<1x64xf32>
    %c0_52 = arith.constant 0 : index
    %c0_53 = arith.constant 0 : index
    %109 = vector.load %arg9[%c0_52, %c0_53] : memref<16x64xf32, #tpu.memory_space<vmem>>, vector<1x64xf32>
    %c4 = arith.constant 4 : index
    %c0_54 = arith.constant 0 : index
    %110 = vector.load %arg9[%c4, %c0_54] : memref<16x64xf32, #tpu.memory_space<vmem>>, vector<1x64xf32>
    %c7 = arith.constant 7 : index
    %c0_55 = arith.constant 0 : index
    %111 = vector.load %arg9[%c7, %c0_55] : memref<16x64xf32, #tpu.memory_space<vmem>>, vector<1x64xf32>
    %c0_56 = arith.constant 0 : index
    %c0_57 = arith.constant 0 : index
    %112 = vector.load %arg9[%c0_56, %c0_57] : memref<16x64xf32, #tpu.memory_space<vmem>>, vector<1x64xf32>
    %c0_58 = arith.constant 0 : index
    %c0_59 = arith.constant 0 : index
    %113 = vector.load %arg9[%c0_58, %c0_59] : memref<16x64xf32, #tpu.memory_space<vmem>>, vector<1x64xf32>
    %114 = tpu.concatenate %106, %107, %108, %109, %110, %111, %112, %113 in 0 : vector<1x64xf32>, vector<1x64xf32>, vector<1x64xf32>, vector<1x64xf32>, vector<1x64xf32>, vector<1x64xf32>, vector<1x64xf32>, vector<1x64xf32> -> vector<8x64xf32>
    %115 = vector.extract_strided_slice %114 {offsets = [0, 0], sizes = [8, 32], strides = [1, 1]} : vector<8x64xf32> to vector<8x32xf32>
    %116 = vector.extract_strided_slice %114 {offsets = [0, 32], sizes = [8, 32], strides = [1, 1]} : vector<8x64xf32> to vector<8x32xf32>
    %cst_60 = arith.constant dense<0.000000e+00> : vector<8x128xf32>
    %117 = tpu.matmul %116, %9, %cst_60 {dimension_numbers = #tpu.dot_dimension_numbers<[1], [0], [0], [1], [0, 0, 1, 1], [], []>} : vector<8x32xf32>, vector<32x128xf32>, vector<8x128xf32> -> vector<8x128xf32>
    %118 = vector.extract_strided_slice %117 {offsets = [0, 0], sizes = [4, 128], strides = [1, 1]} : vector<8x128xf32> to vector<4x128xf32>
    %119 = vector.extract_strided_slice %118 {offsets = [0, 0], sizes = [4, 96], strides = [1, 1]} : vector<4x128xf32> to vector<4x96xf32>
    %cst_61 = arith.constant dense<0.000000e+00> : vector<96xf32>
    %120 = vector.multi_reduction <add>, %119, %cst_61 [0] : vector<4x96xf32> to vector<96xf32>
    %121 = vector.shape_cast %120 : vector<96xf32> to vector<1x96xf32>
    %122 = vector.extract_strided_slice %118 {offsets = [0, 96], sizes = [4, 32], strides = [1, 1]} : vector<4x128xf32> to vector<4x32xf32>
    %123 = vector.extract_strided_slice %105 {offsets = [0, 0], sizes = [1, 32], strides = [1, 1]} : vector<2x32xf32> to vector<1x32xf32>
    %124 = vector.broadcast %123 : vector<1x32xf32> to vector<4x32xf32>
    %125 = arith.addf %122, %124 : vector<4x32xf32>
    %126 = arith.negf %125 : vector<4x32xf32>
    %127 = math.exp %126 : vector<4x32xf32>
    %cst_62 = arith.constant 1.000000e+00 : f32
    %128 = vector.broadcast %cst_62 : f32 to vector<4x32xf32>
    %129 = arith.addf %128, %127 : vector<4x32xf32>
    %130 = arith.divf %128, %129 : vector<4x32xf32>
    %131 = vector.extract_strided_slice %115 {offsets = [0, 0], sizes = [4, 32], strides = [1, 1]} : vector<8x32xf32> to vector<4x32xf32>
    %132 = arith.mulf %130, %131 : vector<4x32xf32>
    %cst_63 = arith.constant dense<0.000000e+00> : vector<32xf32>
    %133 = vector.multi_reduction <add>, %132, %cst_63 [0] : vector<4x32xf32> to vector<32xf32>
    %134 = vector.shape_cast %133 : vector<32xf32> to vector<1x32xf32>
    %135 = vector.extract_strided_slice %117 {offsets = [4, 0], sizes = [4, 128], strides = [1, 1]} : vector<8x128xf32> to vector<4x128xf32>
    %136 = vector.extract_strided_slice %135 {offsets = [0, 0], sizes = [4, 96], strides = [1, 1]} : vector<4x128xf32> to vector<4x96xf32>
    %cst_64 = arith.constant dense<0.000000e+00> : vector<96xf32>
    %137 = vector.multi_reduction <add>, %136, %cst_64 [0] : vector<4x96xf32> to vector<96xf32>
    %138 = vector.shape_cast %137 : vector<96xf32> to vector<1x96xf32>
    %139 = vector.extract_strided_slice %135 {offsets = [0, 96], sizes = [4, 32], strides = [1, 1]} : vector<4x128xf32> to vector<4x32xf32>
    %140 = vector.extract_strided_slice %105 {offsets = [1, 0], sizes = [1, 32], strides = [1, 1]} : vector<2x32xf32> to vector<1x32xf32>
    %141 = vector.broadcast %140 : vector<1x32xf32> to vector<4x32xf32>
    %142 = arith.addf %139, %141 : vector<4x32xf32>
    %143 = arith.negf %142 : vector<4x32xf32>
    %144 = math.exp %143 : vector<4x32xf32>
    %cst_65 = arith.constant 1.000000e+00 : f32
    %145 = vector.broadcast %cst_65 : f32 to vector<4x32xf32>
    %146 = arith.addf %145, %144 : vector<4x32xf32>
    %147 = arith.divf %145, %146 : vector<4x32xf32>
    %148 = vector.extract_strided_slice %115 {offsets = [4, 0], sizes = [4, 32], strides = [1, 1]} : vector<8x32xf32> to vector<4x32xf32>
    %149 = arith.mulf %147, %148 : vector<4x32xf32>
    %cst_66 = arith.constant dense<0.000000e+00> : vector<32xf32>
    %150 = vector.multi_reduction <add>, %149, %cst_66 [0] : vector<4x32xf32> to vector<32xf32>
    %151 = vector.shape_cast %150 : vector<32xf32> to vector<1x32xf32>
    %152 = tpu.concatenate %121, %138 in 0 : vector<1x96xf32>, vector<1x96xf32> -> vector<2x96xf32>
    %153 = tpu.concatenate %134, %151 in 0 : vector<1x32xf32>, vector<1x32xf32> -> vector<2x32xf32>
    %154 = arith.addf %104, %152 : vector<2x96xf32>
    %155 = vector.extract_strided_slice %154 {offsets = [0, 0], sizes = [2, 32], strides = [1, 1]} : vector<2x96xf32> to vector<2x32xf32>
    %156 = arith.negf %155 : vector<2x32xf32>
    %157 = math.exp %156 : vector<2x32xf32>
    %cst_67 = arith.constant 1.000000e+00 : f32
    %158 = vector.broadcast %cst_67 : f32 to vector<2x32xf32>
    %159 = arith.addf %158, %157 : vector<2x32xf32>
    %160 = arith.divf %158, %159 : vector<2x32xf32>
    %161 = vector.extract_strided_slice %154 {offsets = [0, 32], sizes = [2, 32], strides = [1, 1]} : vector<2x96xf32> to vector<2x32xf32>
    %162 = arith.negf %161 : vector<2x32xf32>
    %163 = math.exp %162 : vector<2x32xf32>
    %cst_68 = arith.constant 1.000000e+00 : f32
    %164 = vector.broadcast %cst_68 : f32 to vector<2x32xf32>
    %165 = arith.addf %164, %163 : vector<2x32xf32>
    %166 = arith.divf %164, %165 : vector<2x32xf32>
    %167 = vector.extract_strided_slice %154 {offsets = [0, 64], sizes = [2, 32], strides = [1, 1]} : vector<2x96xf32> to vector<2x32xf32>
    %168 = math.tanh %167 : vector<2x32xf32>
    %169 = arith.mulf %160, %168 : vector<2x32xf32>
    %170 = arith.addf %169, %153 : vector<2x32xf32>
    %171 = math.tanh %170 : vector<2x32xf32>
    %172 = arith.mulf %166, %171 : vector<2x32xf32>
    %c8_69 = arith.constant 8 : index
    %c0_70 = arith.constant 0 : index
    %173 = vector.load %arg9[%c8_69, %c0_70] : memref<16x64xf32, #tpu.memory_space<vmem>>, vector<2x32xf32>
    tpu.vector_store %arg9[%c8_69, %c0_70], %170 {strides = array<i32>} : memref<16x64xf32, #tpu.memory_space<vmem>>, vector<2x32xf32>,
    %c8_71 = arith.constant 8 : index
    %c32_72 = arith.constant 32 : index
    %174 = vector.load %arg9[%c8_71, %c32_72] : memref<16x64xf32, #tpu.memory_space<vmem>>, vector<2x32xf32>
    tpu.vector_store %arg9[%c8_71, %c32_72], %172 {strides = array<i32>} : memref<16x64xf32, #tpu.memory_space<vmem>>, vector<2x32xf32>,
    %c8_73 = arith.constant 8 : index
    %c0_74 = arith.constant 0 : index
    %175 = vector.load %arg9[%c8_73, %c0_74] : memref<16x64xf32, #tpu.memory_space<vmem>>, vector<1x32xf32>
    %c9 = arith.constant 9 : index
    %c0_75 = arith.constant 0 : index
    %176 = vector.load %arg9[%c9, %c0_75] : memref<16x64xf32, #tpu.memory_space<vmem>>, vector<1x32xf32>
    %177 = arith.mulf %175, %176 : vector<1x32xf32>
    %178 = arith.subf %175, %176 : vector<1x32xf32>
    %179 = math.absf %178 : vector<1x32xf32>
    %c0_76 = arith.constant 0 : index
    %c0_77 = arith.constant 0 : index
    %180 = vector.load %arg4[%c0_76, %c0_77] : memref<128x32xf32, #tpu.memory_space<vmem>>, vector<128x32xf32>
    %181 = vector.extract_strided_slice %180 {offsets = [0, 0], sizes = [32, 32], strides = [1, 1]} : vector<128x32xf32> to vector<32x32xf32>
    %cst_78 = arith.constant dense<0.000000e+00> : vector<1x32xf32>
    %182 = tpu.matmul %175, %181, %cst_78 {dimension_numbers = #tpu.dot_dimension_numbers<[1], [0], [0], [1], [0, 0, 1, 1], [], []>} : vector<1x32xf32>, vector<32x32xf32>, vector<1x32xf32> -> vector<1x32xf32>
    %183 = vector.extract_strided_slice %180 {offsets = [32, 0], sizes = [32, 32], strides = [1, 1]} : vector<128x32xf32> to vector<32x32xf32>
    %cst_79 = arith.constant dense<0.000000e+00> : vector<1x32xf32>
    %184 = tpu.matmul %176, %183, %cst_79 {dimension_numbers = #tpu.dot_dimension_numbers<[1], [0], [0], [1], [0, 0, 1, 1], [], []>} : vector<1x32xf32>, vector<32x32xf32>, vector<1x32xf32> -> vector<1x32xf32>
    %185 = arith.addf %182, %184 : vector<1x32xf32>
    %186 = vector.extract_strided_slice %180 {offsets = [64, 0], sizes = [32, 32], strides = [1, 1]} : vector<128x32xf32> to vector<32x32xf32>
    %cst_80 = arith.constant dense<0.000000e+00> : vector<1x32xf32>
    %187 = tpu.matmul %177, %186, %cst_80 {dimension_numbers = #tpu.dot_dimension_numbers<[1], [0], [0], [1], [0, 0, 1, 1], [], []>} : vector<1x32xf32>, vector<32x32xf32>, vector<1x32xf32> -> vector<1x32xf32>
    %188 = arith.addf %185, %187 : vector<1x32xf32>
    %189 = vector.extract_strided_slice %180 {offsets = [96, 0], sizes = [32, 32], strides = [1, 1]} : vector<128x32xf32> to vector<32x32xf32>
    %cst_81 = arith.constant dense<0.000000e+00> : vector<1x32xf32>
    %190 = tpu.matmul %179, %189, %cst_81 {dimension_numbers = #tpu.dot_dimension_numbers<[1], [0], [0], [1], [0, 0, 1, 1], [], []>} : vector<1x32xf32>, vector<32x32xf32>, vector<1x32xf32> -> vector<1x32xf32>
    %191 = arith.addf %188, %190 : vector<1x32xf32>
    %c0_82 = arith.constant 0 : index
    %c0_83 = arith.constant 0 : index
    %192 = vector.load %arg5[%c0_82, %c0_83] : memref<1x32xf32, #tpu.memory_space<vmem>>, vector<1x32xf32>
    %193 = arith.addf %191, %192 : vector<1x32xf32>
    %cst_84 = arith.constant 0.000000e+00 : f32
    %194 = vector.broadcast %cst_84 : f32 to vector<1x32xf32>
    %195 = arith.maximumf %193, %194 : vector<1x32xf32>
    %c0_85 = arith.constant 0 : index
    %c0_86 = arith.constant 0 : index
    %196 = vector.load %arg6[%c0_85, %c0_86] : memref<32x3xf32, #tpu.memory_space<vmem>>, vector<32x3xf32>
    %cst_87 = arith.constant dense<0.000000e+00> : vector<1x3xf32>
    %197 = tpu.matmul %195, %196, %cst_87 {dimension_numbers = #tpu.dot_dimension_numbers<[1], [0], [0], [1], [0, 0, 1, 1], [], []>} : vector<1x32xf32>, vector<32x3xf32>, vector<1x3xf32> -> vector<1x3xf32>
    %c0_88 = arith.constant 0 : index
    %c0_89 = arith.constant 0 : index
    %198 = vector.load %arg7[%c0_88, %c0_89] : memref<1x3xf32, #tpu.memory_space<vmem>>, vector<1x3xf32>
    %199 = arith.addf %197, %198 : vector<1x3xf32>
    %cst_90 = arith.constant dense<0xFF800000> : vector<1xf32>
    %200 = vector.multi_reduction <maximumf>, %199, %cst_90 [1] : vector<1x3xf32> to vector<1xf32>
    %201 = vector.shape_cast %200 : vector<1xf32> to vector<1x1xf32>
    %202 = vector.broadcast %201 : vector<1x1xf32> to vector<1x3xf32>
    %203 = arith.subf %199, %202 : vector<1x3xf32>
    %204 = math.exp %203 : vector<1x3xf32>
    %cst_91 = arith.constant dense<0.000000e+00> : vector<1xf32>
    %205 = vector.multi_reduction <add>, %204, %cst_91 [1] : vector<1x3xf32> to vector<1xf32>
    %206 = vector.shape_cast %205 : vector<1xf32> to vector<1x1xf32>
    %207 = math.log %206 : vector<1x1xf32>
    %208 = vector.broadcast %207 : vector<1x1xf32> to vector<1x3xf32>
    %209 = arith.subf %203, %208 : vector<1x3xf32>
    %c0_92 = arith.constant 0 : index
    %c0_93 = arith.constant 0 : index
    %210 = vector.load %arg8[%c0_92, %c0_93] : memref<1x3xf32, #tpu.memory_space<vmem>>, vector<1x3xf32>
    tpu.vector_store %arg8[%c0_92, %c0_93], %209 {strides = array<i32>} : memref<1x3xf32, #tpu.memory_space<vmem>>, vector<1x3xf32>,
    return
  }
}

</mosaic_0001>

<bundles_post_ra>
// kernel: run.1
= control target key start
LH: loop header
LB: loop body
LE: loop exit
PB: predicated region body
PF: predicated region fallthrough
CT: control target
= control target key end

     0   :  { %vm51_vm0 = vcmask 1043456   ;;  %s972_s0 = inlined_call_operand.vmem [shape: f32[16,36], index: 0, kind: input, shape index: {}]   ;;  %s973_s1 = inlined_call_operand.vmem [shape: f32[36,128], index: 1, kind: input, shape index: {}]   ;;  %s974_s2 = inlined_call_operand.vmem [shape: f32[1,128], index: 2, kind: input, shape index: {}]   ;;  %s975_s3 = inlined_call_operand.vmem [shape: f32[32,128], index: 3, kind: input, shape index: {}]   ;;  %s976_s4 = inlined_call_operand.vmem [shape: f32[128,32], index: 4, kind: input, shape index: {}]   ;;  %s977_s5 = inlined_call_operand.vmem [shape: f32[1,32], index: 5, kind: input, shape index: {}]   ;;  %s978_s6 = inlined_call_operand.vmem [shape: f32[32,3], index: 6, kind: input, shape index: {}]   ;;  %s979_s7 = inlined_call_operand.vmem [shape: f32[1,3], index: 7, kind: input, shape index: {}]   ;;  %s980_s8 = inlined_call_operand.hbm [shape: f32[1,3], index: 8, kind: output, shape index: {}]  }
   0x1   :  { %v39_v0 = vld [vmem:[%s973_s1 + $0x20] sm:$0xf]  ;;  %v38_v1 = vld [vmem:[%s973_s1 + $0x18] sm:$0xff]  ;;  %v37_v2 = vld [vmem:[%s973_s1 + $0x10] sm:$0xff] }
   0x2   :  { %657 = vmatpush.msk.msra.mxu0 %vm51_vm0, %v39_v0 }
   0x3   :  { %13 = vsyncpa [#allocation5], 0  ;;  %v36_v3 = vld [vmem:[%s973_s1 + $0x8] sm:$0xff]  ;;  %v35_v4 = vld [vmem:[%s973_s1] sm:$0xff]  ;;  %vm44_vm1 = vcmask 293888   ;;  %s750_s1 = smov 64  }
   0x4   :  { %67 = vmatpush.msra.mxu0 %v38_v1  ;;  %v33_v5 = vld [vmem:[%s972_s0] sm:$0xff]  ;;  %vm30_vm2 = vcmask 523264   ;;  %v751_v14 = vmov 0.0   ;;  %vm116_vm7 = vcmask 258048   ;;  %v83_v28 = vld [vmem:[%s975_s3 + $0x18] sm:$0xff]  ;;  %v82_v29 = vld [vmem:[%s975_s3 + $0x10] sm:$0xff] }
   0x5   :  { %v823_v6 = vld [vmem:[%s974_s2] ss:$0 sm:$0xff]  ;;  %31 = vst.msk [vmem:[#allocation2] sm:$0xff] %vm30_vm2, %v751_v14  ;;  %s752_s2 = smov 32   ;;  %173 = vmatpush.msra.mxu1 %v83_v28  ;;  %353 = vmatpush.msra.mxu2 %v83_v28  ;;  %v81_v30 = vld [vmem:[%s975_s3 + $0x8] sm:$0xff]  ;;  %vm118_vm8 = vcmask 520448  }
   0x6   :  { %68 = vmatpush.msra.mxu0 %v37_v2  ;;  %32 = vst.msk [vmem:[#allocation2 + $0x8] sm:$0xff] %vm30_vm2, %v751_v14  ;;  %v80_v31 = vld [vmem:[%s975_s3] sm:$0xff]  ;;  %vm142_vm9 = vcmask 1040384   ;;  %vm144_vm10 = vcmask 1041408   ;;  %vm146_vm11 = vcmask 1042432   ;;  %vm149_vm12 = vcmask 1044480  }
   0x7   :  { %174 = vmatpush.msra.mxu1 %v82_v29  ;;  %354 = vmatpush.msra.mxu2 %v82_v29  ;;  %vm151_vm13 = vcmask 1045504   ;;  %vm983_vm14 = vcmask 1046528   ;;  %s753_s3 = smov 96   ;;  %vm982_vm15 = vcmask 261120   ;;  %vm981_vm2 = vcmask 781312   ;;  %s648_s22 = sshll.u32 %s980_s8, 4  ;;  %s649_s22 = int_to_ptr.hbm [resolvable:$true] %s648_s22 }
   0x8   :  { %69 = vmatpush.msra.mxu0 %v36_v3 }
   0x9   :  { %175 = vmatpush.msra.mxu1 %v81_v30  ;;  %355 = vmatpush.msra.mxu2 %v81_v30 }
   0xa   :  { %70 = vmatpush.msra.mxu0 %v35_v4 }
   0xb   :  { %658 = vmatmul.msk.f32.vlgmr.msra.gmra.mxu0 %vm44_vm1, %v33_v5  ;;  %176 = vmatpush.msra.mxu1 %v80_v31 }
   0xc   :  { %356 = vmatpush.msra.mxu2 %v80_v31  ;;  %v123_v34 = vld [vmem:[#allocation2] sm:$0x1] }
   0xd   :  { %v129_v36 = vrot.slane %v123_v34, 6  ;;  %v131_v39 = vrot.slane %v123_v34, 5  ;;  %v136_v41 = vrot.slane %v123_v34, 3  ;;  %v138_v44 = vrot.slane %v123_v34, 2 }
   0xe   :  { %v140_v46 = vrot.slane %v123_v34, 1 }
  0x88   :  { %v72_v7 = vpop.f32.mrf.mxu0 }
  0x89   :  { %v73_v8 = vadd.f32 %v823_v6, %v72_v7 }
  0x8b   :  { %78 = vst [vmem:[#allocation3] sm:$0xff] %v73_v8 }
  0x92   :  { %v84_v9 = vld [vmem:[#allocation3 + $0x1] sm:$0x1f]  ;;  %v120_v53 = vld [vmem:[#allocation3 + $0x6] sm:$0x3] }
  0x93   :  { %680 = vtanh.f32 %v84_v9  ;;  %v660_v11 = vmul.f32 -1.442695, %v84_v9  ;;  %v189_v54 = vperm.slane %v120_v53, 0  ;;  %v230_v55 = vperm.slane %v120_v53, 1 }
  0x95   :  { %682 = vpow2.f32 %v660_v11 }
  0x99   :  { %v681_v10 = vpop.eup %680 }
  0x9a   :  { %106 = vrot.lane.b32.xlu0 %v681_v10, %s750_s1 }
  0x9b   :  { %v683_v12 = vpop.eup %682 }
  0x9c   :  { %v88_v13 = vadd.f32 1.0, %v683_v12 }
  0x9e   :  { %684 = vrcp.f32 %v88_v13  ;;  %v100_v20 = vand.u32 2147483648, %v88_v13  ;;  %vm94_vm4 = vweird.f32 %v88_v13  ;;  %v98_v21 = vand.u32 2147483647, %v88_v13 }
  0xa0   :  { %v101_v23 = vor.u32 1.1754944e-38, %v100_v20  ;;  %vm99_vm6 = vcmp.eq.f32.partialorder %v98_v21, 8.507059e+37 }
  0xa4   :  { %v685_v15 = vpop.eup %684 }
  0xa5   :  { %v90_v16 = vmul.f32 %v685_v15, %v88_v13  ;;  %vm95_vm3 = vweird.f32 %v685_v15 }
  0xa6   :  { %vm96_vm5 = vmor %vm94_vm4, %vm95_vm3 }
  0xa7   :  { %v91_v17 = vsub.f32 1.0, %v90_v16 }
  0xa9   :  { %v92_v18 = vmul.f32 %v685_v15, %v91_v17 }
  0xab   :  { %v93_v19 = vadd.f32 %v685_v15, %v92_v18 }
  0xad   :  { %v97_v22 = vsel %vm96_vm5, %v685_v15, %v93_v19 }
  0xae   :  { %v102_v25 = vsel %vm99_vm6, %v101_v23, %v97_v22 }
 0x10c   :  { %v107_v24 = vpop.permute.xlu0 %106 }
 0x10d   :  { %v109_v26 = vmul.f32 %v107_v24, %v102_v25 }
 0x10f   :  { %686 = vtanh.f32 %v109_v26  ;;  %117 = vst.msk [vmem:[#allocation2 + $0x1] sm:$0x1f] %vm116_vm7, %v109_v26 }
 0x115   :  { %v687_v27 = vpop.eup %686 }
 0x116   :  { %112 = vrot.lane.b32.xlu0 %v687_v27, %s752_s2 }
 0x188   :  { %v113_v32 = vpop.permute.xlu0 %112 }
 0x189   :  { %v115_v33 = vmul.f32 %v113_v32, %v102_v25 }
 0x18b   :  { %119 = vst.msk [vmem:[#allocation2 + $0x1] sm:$0x1f] %vm118_vm8, %v115_v33 }
 0x192   :  { %v122_v35 = vld [vmem:[#allocation2 + $0x2] sm:$0x1]  ;;  %v124_v37 = vld [vmem:[#allocation2 + $0x5] sm:$0x1]  ;;  %v121_v40 = vld [vmem:[#allocation2 + $0x1] sm:$0x1] }
 0x193   :  { %v126_v38 = vrot.slane %v122_v35, 7  ;;  %v134_v43 = vrot.slane %v124_v37, 4 }
 0x195   :  { %v143_v42 = vsel %vm142_vm9, %v121_v40, %v126_v38 }
 0x196   :  { %v145_v45 = vsel %vm144_vm10, %v143_v42, %v129_v36 }
 0x197   :  { %v147_v47 = vsel %vm146_vm11, %v145_v45, %v131_v39 }
 0x198   :  { %v148_v48 = vsel %vm51_vm0, %v147_v47, %v134_v43 }
 0x199   :  { %v150_v49 = vsel %vm149_vm12, %v148_v48, %v136_v41 }
 0x19a   :  { %v152_v50 = vsel %vm151_vm13, %v150_v49, %v138_v44 }
 0x19b   :  { %v154_v51 = vsel %vm983_vm14, %v152_v50, %v140_v46 }
 0x19c   :  { %156 = vrot.lane.b32.xlu1 %v154_v51, %s753_s3 }
 0x20e   :  { %v848_v52 = vpop.permute.xlu1 %156 }
 0x20f   :  { %661 = vmatmul.msk.f32.vlgmr.msra.gmra.mxu1 %vm982_vm15, %v848_v52  ;;  %vm212_vm15 = vcmask 1044224  }
 0x28c   :  { %v178_v56 = vpop.f32.mrf.mxu1 }
 0x28d   :  { %v182_v57 = vsel %vm981_vm2, %v178_v56, 0.0  ;;  %v190_v58 = vadd.f32 %v189_v54, %v178_v56  ;;  %v221_v59 = vrot.slane %v178_v56, 4  ;;  %v231_v60 = vadd.f32 %v230_v55, %v178_v56 }
 0x28e   :  { %v183_v61 = vrot.slane %v182_v57, 4 }
 0x28f   :  { %v662_v62 = vmul.f32 -1.442695, %v190_v58  ;;  %v223_v63 = vsel %vm981_vm2, %v221_v59, 0.0  ;;  %v663_v0 = vmul.f32 -1.442695, %v231_v60 }
 0x290   :  { %v184_v1 = vadd.f32 %v183_v61, %v182_v57  ;;  %v224_v2 = vrot.slane %v223_v63, 4 }
 0x291   :  { %688 = vpow2.f32 %v662_v62 }
 0x292   :  { %v185_v3 = vrot.slane %v184_v1, 2  ;;  %v225_v4 = vadd.f32 %v224_v2, %v223_v63  ;;  %690 = vpow2.f32 %v663_v0 }
 0x294   :  { %v186_v5 = vadd.f32 %v185_v3, %v184_v1  ;;  %v226_v7 = vrot.slane %v225_v4, 2 }
 0x296   :  { %v187_v8 = vrot.slane %v186_v5, 1  ;;  %v227_v9 = vadd.f32 %v226_v7, %v225_v4 }
 0x297   :  { %v689_v10 = vpop.eup %688 }
 0x298   :  { %v691_v11 = vpop.eup %690  ;;  %v194_v12 = vadd.f32 1.0, %v689_v10  ;;  %v228_v13 = vrot.slane %v227_v9, 1  ;;  %v188_v15 = vadd.f32 %v187_v8, %v186_v5 }
 0x299   :  { %v235_v14 = vadd.f32 1.0, %v691_v11 }
 0x29a   :  { %692 = vrcp.f32 %v194_v12  ;;  %v229_v16 = vadd.f32 %v228_v13, %v227_v9  ;;  %v206_v25 = vand.u32 2147483648, %v194_v12  ;;  %v204_v28 = vand.u32 2147483647, %v194_v12  ;;  %v34_v13 = vld [vmem:[%s972_s0 + $0x8] sm:$0xff] }
 0x29b   :  { %694 = vrcp.f32 %v235_v14  ;;  %v247_v29 = vand.u32 2147483648, %v235_v14  ;;  %v245_v31 = vand.u32 2147483647, %v235_v14  ;;  %vm200_vm5 = vweird.f32 %v194_v12  ;;  %659 = vmatmul.msk.f32.gmra.mxu0 %vm44_vm1, %v34_v13 }
 0x29c   :  { %v262_v17 = vsel %vm142_vm9, %v188_v15, %v229_v16  ;;  %v207_v33 = vor.u32 1.1754944e-38, %v206_v25  ;;  %vm241_vm7 = vweird.f32 %v235_v14  ;;  %vm205_vm8 = vcmp.eq.f32.partialorder %v204_v28, 8.507059e+37  ;;  %v308_v16 = vld [vmem:[#allocation2] sm:$0x1] }
 0x29d   :  { %v264_v18 = vadd.f32 %v262_v17, %v120_v53  ;;  %v248_v36 = vor.u32 1.1754944e-38, %v247_v29  ;;  %vm246_vm14 = vcmp.eq.f32.partialorder %v245_v31, 8.507059e+37  ;;  %v307_v17 = vld [vmem:[#allocation2 + $0x3] sm:$0x1]  ;;  %v327_v29 = vrot.slane %v308_v16, 1 }
 0x29e   :  { %vm984_vm1 = vcmask 1046528  }
 0x29f   :  { %696 = vtanh.f32 %v264_v18 }
 0x2a0   :  { %v693_v19 = vpop.eup %692 }
 0x2a1   :  { %v695_v20 = vpop.eup %694  ;;  %v196_v21 = vmul.f32 %v693_v19, %v194_v12  ;;  %vm201_vm3 = vweird.f32 %v693_v19 }
 0x2a2   :  { %v237_v22 = vmul.f32 %v695_v20, %v235_v14  ;;  %vm242_vm4 = vweird.f32 %v695_v20  ;;  %vm202_vm6 = vmor %vm200_vm5, %vm201_vm3  ;;  %vm301_vm5 = vcmask 254976  }
 0x2a3   :  { %v197_v23 = vsub.f32 1.0, %v196_v21  ;;  %vm243_vm2 = vmor %vm241_vm7, %vm242_vm4  ;;  %v317_v21 = vrot.slane %v308_v16, 5 }
 0x2a4   :  { %v238_v24 = vsub.f32 1.0, %v237_v22 }
 0x2a5   :  { %v697_v26 = vpop.eup %696  ;;  %v198_v27 = vmul.f32 %v693_v19, %v197_v23 }
 0x2a6   :  { %286 = vrot.lane.b32.xlu1 %v697_v26, %s750_s1  ;;  %v239_v30 = vmul.f32 %v695_v20, %v238_v24  ;;  %v325_v26 = vrot.slane %v308_v16, 2 }
 0x2a7   :  { %v199_v32 = vadd.f32 %v693_v19, %v198_v27 }
 0x2a8   :  { %v240_v34 = vadd.f32 %v695_v20, %v239_v30 }
 0x2a9   :  { %v203_v35 = vsel %vm202_vm6, %v693_v19, %v199_v32  ;;  %vm303_vm6 = vcmask 517376   ;;  %v309_v19 = vld [vmem:[#allocation2 + $0x4] sm:$0x1] }
 0x2aa   :  { %v208_v37 = vsel %vm205_vm8, %v207_v33, %v203_v35  ;;  %v244_v38 = vsel %vm243_vm2, %v695_v20, %v240_v34  ;;  %v312_v20 = vrot.slane %v307_v17, 7  ;;  %v320_v25 = vrot.slane %v309_v19, 4 }
 0x2ab   :  { %v211_v39 = vmul.f32 %v208_v37, %v848_v52  ;;  %v249_v40 = vsel %vm246_vm14, %v248_v36, %v244_v38 }
 0x2ac   :  { %v251_v41 = vmul.f32 %v249_v40, %v848_v52  ;;  %v664_v52 = vmul.f32 -1.442695, %v264_v18  ;;  %v315_v18 = vrot.slane %v308_v16, 6 }
 0x2ad   :  { %v213_v42 = vsel %vm212_vm15, %v211_v39, 0.0 }
 0x2ae   :  { %v214_v43 = vrot.slane %v213_v42, 4  ;;  %v253_v44 = vrot.slane %v251_v41, 4  ;;  %698 = vpow2.f32 %v664_v52 }
 0x2b0   :  { %v215_v45 = vadd.f32 %v214_v43, %v213_v42  ;;  %v255_v46 = vsel %vm212_vm15, %v253_v44, 0.0 }
 0x2b1   :  { %v256_v47 = vrot.slane %v255_v46, 4 }
 0x2b2   :  { %v216_v48 = vrot.slane %v215_v45, 2 }
 0x2b3   :  { %v257_v49 = vadd.f32 %v256_v47, %v255_v46 }
 0x2b4   :  { %v217_v50 = vadd.f32 %v216_v48, %v215_v45  ;;  %v699_v59 = vpop.eup %698 }
 0x2b5   :  { %v258_v51 = vrot.slane %v257_v49, 2  ;;  %v268_v60 = vadd.f32 1.0, %v699_v59 }
 0x2b6   :  { %v218_v53 = vrot.slane %v217_v50, 1 }
 0x2b7   :  { %v259_v54 = vadd.f32 %v258_v51, %v257_v49  ;;  %700 = vrcp.f32 %v268_v60  ;;  %v280_v2 = vand.u32 2147483648, %v268_v60  ;;  %vm274_vm2 = vweird.f32 %v268_v60 }
 0x2b8   :  { %v219_v56 = vadd.f32 %v218_v53, %v217_v50  ;;  %v278_v3 = vand.u32 2147483647, %v268_v60 }
 0x2b9   :  { %v260_v55 = vrot.slane %v259_v54, 1  ;;  %v281_v5 = vor.u32 1.1754944e-38, %v280_v2 }
 0x2ba   :  { %vm279_vm4 = vcmp.eq.f32.partialorder %v278_v3, 8.507059e+37 }
 0x2bb   :  { %v261_v57 = vadd.f32 %v260_v55, %v259_v54 }
 0x2bd   :  { %v263_v58 = vsel %vm142_vm9, %v219_v56, %v261_v57  ;;  %v701_v61 = vpop.eup %700 }
 0x2be   :  { %291 = vrot.lane.b32.xlu2 %v263_v58, %s752_s2  ;;  %v270_v62 = vmul.f32 %v701_v61, %v268_v60  ;;  %vm275_vm14 = vweird.f32 %v701_v61 }
 0x2bf   :  { %vm276_vm3 = vmor %vm274_vm2, %vm275_vm14 }
 0x2c0   :  { %v271_v63 = vsub.f32 1.0, %v270_v62 }
 0x2c2   :  { %v272_v0 = vmul.f32 %v701_v61, %v271_v63 }
 0x2c4   :  { %v273_v1 = vadd.f32 %v701_v61, %v272_v0 }
 0x2c6   :  { %v277_v4 = vsel %vm276_vm3, %v701_v61, %v273_v1 }
 0x2c7   :  { %v282_v8 = vsel %vm279_vm4, %v281_v5, %v277_v4 }
 0x318   :  { %v287_v7 = vpop.permute.xlu1 %286  ;;  %v292_v10 = vpop.permute.xlu2 %291 }
 0x319   :  { %v289_v9 = vmul.f32 %v287_v7, %v282_v8  ;;  %v75_v35 = vpop.f32.mrf.mxu0 }
 0x31a   :  { %v76_v36 = vadd.f32 %v823_v6, %v75_v35 }
 0x31b   :  { %v294_v11 = vadd.f32 %v292_v10, %v289_v9 }
 0x31c   :  { %79 = vst [vmem:[#allocation3 + $0x8] sm:$0xff] %v76_v36 }
 0x31d   :  { %702 = vtanh.f32 %v294_v11  ;;  %302 = vst.msk [vmem:[#allocation2 + $0x6] sm:$0x3] %vm301_vm5, %v294_v11 }
 0x323   :  { %v703_v12 = vpop.eup %702  ;;  %v305_v38 = vld [vmem:[#allocation3 + $0x8] sm:$0x3] }
 0x324   :  { %297 = vrot.lane.b32.xlu2 %v703_v12, %s752_s2  ;;  %v368_v39 = vperm.slane %v305_v38, 0  ;;  %v408_v40 = vperm.slane %v305_v38, 1 }
 0x37e   :  { %v298_v14 = vpop.permute.xlu2 %297 }
 0x37f   :  { %v300_v15 = vmul.f32 %v298_v14, %v282_v8 }
 0x381   :  { %304 = vst.msk [vmem:[#allocation2 + $0x6] sm:$0x3] %vm303_vm6, %v300_v15 }
 0x388   :  { %v306_v22 = vld [vmem:[#allocation2 + $0x6] sm:$0x1]  ;;  %v310_v23 = vld [vmem:[#allocation2 + $0x7] sm:$0x1] }
 0x389   :  { %v329_v24 = vsel %vm142_vm9, %v306_v22, %v312_v20  ;;  %v323_v28 = vrot.slane %v310_v23, 3 }
 0x38a   :  { %v330_v27 = vsel %vm144_vm10, %v329_v24, %v315_v18  ;;  %vm985_vm10 = vcmask 261120  }
 0x38b   :  { %v331_v30 = vsel %vm146_vm11, %v330_v27, %v317_v21 }
 0x38c   :  { %v332_v31 = vsel %vm51_vm0, %v331_v30, %v320_v25  ;;  %vm986_vm0 = vcmask 781312  }
 0x38d   :  { %v333_v32 = vsel %vm149_vm12, %v332_v31, %v323_v28  ;;  %vm987_vm11 = vmmov %vm986_vm0 }
 0x38e   :  { %v334_v33 = vsel %vm151_vm13, %v333_v32, %v325_v26 }
 0x38f   :  { %v335_v34 = vsel %vm984_vm1, %v334_v33, %v327_v29 }
 0x390   :  { %337 = vrot.lane.b32.xlu0 %v335_v34, %s753_s3 }
 0x402   :  { %v878_v37 = vpop.permute.xlu0 %337 }
 0x403   :  { %665 = vmatmul.msk.f32.vlgmr.msra.gmra.mxu2 %vm985_vm10, %v878_v37 }
 0x486   :  { %v358_v41 = vpop.f32.mrf.mxu2 }
 0x487   :  { %v361_v42 = vsel %vm986_vm0, %v358_v41, 0.0  ;;  %v369_v43 = vadd.f32 %v368_v39, %v358_v41  ;;  %v399_v44 = vrot.slane %v358_v41, 4  ;;  %v409_v45 = vadd.f32 %v408_v40, %v358_v41 }
 0x488   :  { %v362_v46 = vrot.slane %v361_v42, 4 }
 0x489   :  { %v666_v47 = vmul.f32 -1.442695, %v369_v43  ;;  %v401_v48 = vsel %vm987_vm11, %v399_v44, 0.0  ;;  %v667_v6 = vmul.f32 -1.442695, %v409_v45 }
 0x48a   :  { %v363_v49 = vadd.f32 %v362_v46, %v361_v42  ;;  %v402_v50 = vrot.slane %v401_v48, 4 }
 0x48b   :  { %704 = vpow2.f32 %v666_v47 }
 0x48c   :  { %v364_v51 = vrot.slane %v363_v49, 2  ;;  %v403_v53 = vadd.f32 %v402_v50, %v401_v48  ;;  %706 = vpow2.f32 %v667_v6 }
 0x48e   :  { %v365_v54 = vadd.f32 %v364_v51, %v363_v49  ;;  %v404_v55 = vrot.slane %v403_v53, 2 }
 0x490   :  { %v366_v56 = vrot.slane %v365_v54, 1  ;;  %v405_v57 = vadd.f32 %v404_v55, %v403_v53 }
 0x491   :  { %v705_v58 = vpop.eup %704 }
 0x492   :  { %v707_v52 = vpop.eup %706  ;;  %v373_v59 = vadd.f32 1.0, %v705_v58  ;;  %v406_v60 = vrot.slane %v405_v57, 1  ;;  %v367_v62 = vadd.f32 %v366_v56, %v365_v54 }
 0x493   :  { %v413_v61 = vadd.f32 1.0, %v707_v52 }
 0x494   :  { %708 = vrcp.f32 %v373_v59  ;;  %v407_v63 = vadd.f32 %v406_v60, %v405_v57  ;;  %v385_v9 = vand.u32 2147483648, %v373_v59  ;;  %v383_v12 = vand.u32 2147483647, %v373_v59  ;;  %v489_v60 = vld [vmem:[%s976_s4 + $0x18] sm:$0xff] }
 0x495   :  { %710 = vrcp.f32 %v413_v61  ;;  %v425_v13 = vand.u32 2147483648, %v413_v61  ;;  %v423_v15 = vand.u32 2147483647, %v413_v61  ;;  %vm379_vm7 = vweird.f32 %v373_v59  ;;  %540 = vmatpush.msrb.mxu1 %v489_v60 }
 0x496   :  { %v440_v0 = vsel %vm142_vm9, %v367_v62, %v407_v63  ;;  %v386_v17 = vor.u32 1.1754944e-38, %v385_v9  ;;  %vm419_vm14 = vweird.f32 %v413_v61  ;;  %vm384_vm2 = vcmp.eq.f32.partialorder %v383_v12, 8.507059e+37  ;;  %v488_v62 = vld [vmem:[%s976_s4 + $0x10] sm:$0xff]  ;;  %v497_v63 = vld [vmem:[%s976_s4 + $0x58] sm:$0xff] }
 0x497   :  { %v442_v1 = vadd.f32 %v440_v0, %v305_v38  ;;  %v426_v20 = vor.u32 1.1754944e-38, %v425_v13  ;;  %vm424_vm4 = vcmp.eq.f32.partialorder %v423_v15, 8.507059e+37  ;;  %563 = vmatpush.msrb.mxu2 %v497_v63  ;;  %v491_v0 = vld [vmem:[%s976_s4 + $0x28] sm:$0xff]  ;;  %541 = vmatpush.msrb.mxu1 %v488_v62  ;;  %v500_v9 = vld [vmem:[%s976_s4 + $0x70] sm:$0xff] }
 0x499   :  { %712 = vtanh.f32 %v442_v1 }
 0x49a   :  { %v709_v2 = vpop.eup %708 }
 0x49b   :  { %v711_v3 = vpop.eup %710  ;;  %v375_v4 = vmul.f32 %v709_v2, %v373_v59  ;;  %vm380_vm12 = vweird.f32 %v709_v2  ;;  %v493_v59 = vld [vmem:[%s976_s4 + $0x38] sm:$0xff] }
 0x49c   :  { %v415_v5 = vmul.f32 %v711_v3, %v413_v61  ;;  %vm420_vm13 = vweird.f32 %v711_v3  ;;  %vm381_vm8 = vmor %vm379_vm7, %vm380_vm12  ;;  %v492_v61 = vld [vmem:[%s976_s4 + $0x30] sm:$0xff]  ;;  %517 = vmatpush.msra.mxu3 %v493_v59 }
 0x49d   :  { %v376_v7 = vsub.f32 1.0, %v375_v4  ;;  %vm421_vm3 = vmor %vm419_vm14, %vm420_vm13  ;;  %v490_v4 = vld [vmem:[%s976_s4 + $0x20] sm:$0xff]  ;;  %vm627_vm13 = vcmask 16384  }
 0x49e   :  { %v416_v8 = vsub.f32 1.0, %v415_v5  ;;  %518 = vmatpush.msra.mxu3 %v492_v61  ;;  %v486_v5 = vld [vmem:[%s976_s4] sm:$0xff] }
 0x49f   :  { %v713_v10 = vpop.eup %712  ;;  %v377_v11 = vmul.f32 %v709_v2, %v376_v7  ;;  %v501_v7 = vld [vmem:[%s976_s4 + $0x78] sm:$0xff] }
 0x4a0   :  { %464 = vrot.lane.b32.xlu1 %v713_v10, %s750_s1  ;;  %v417_v14 = vmul.f32 %v711_v3, %v416_v8  ;;  %519 = vmatpush.msra.mxu3 %v491_v0  ;;  %v494_v8 = vld [vmem:[%s976_s4 + $0x40] sm:$0xff]  ;;  %v499_v10 = vld [vmem:[%s976_s4 + $0x68] sm:$0xff] }
 0x4a1   :  { %v378_v16 = vadd.f32 %v709_v2, %v377_v11  ;;  %v498_v11 = vld [vmem:[%s976_s4 + $0x60] sm:$0xff] }
 0x4a2   :  { %v418_v18 = vadd.f32 %v711_v3, %v417_v14  ;;  %520 = vmatpush.msra.mxu3 %v490_v4 }
 0x4a3   :  { %v382_v19 = vsel %vm381_vm8, %v709_v2, %v378_v16  ;;  %v496_v2 = vld [vmem:[%s976_s4 + $0x50] sm:$0xff] }
 0x4a4   :  { %v387_v21 = vsel %vm384_vm2, %v386_v17, %v382_v19  ;;  %v422_v22 = vsel %vm421_vm3, %v711_v3, %v418_v18  ;;  %v495_v3 = vld [vmem:[%s976_s4 + $0x48] sm:$0xff]  ;;  %564 = vmatpush.msrb.mxu2 %v496_v2  ;;  %587 = vmatpush.msrb.mxu3 %v501_v7  ;;  %v602_v19 = vld [vmem:[%s978_s6 + $0x18] sm:$0xff] }
 0x4a5   :  { %v390_v23 = vmul.f32 %v387_v21, %v878_v37  ;;  %v427_v24 = vsel %vm424_vm4, %v426_v20, %v422_v22  ;;  %v601_v20 = vld [vmem:[%s978_s6 + $0x10] sm:$0xff]  ;;  %v600_v21 = vld [vmem:[%s978_s6 + $0x8] sm:$0xff]  ;;  %v599_v22 = vld [vmem:[%s978_s6] sm:$0xff] }
 0x4a6   :  { %v429_v25 = vmul.f32 %v427_v24, %v878_v37  ;;  %v668_v37 = vmul.f32 -1.442695, %v442_v1  ;;  %v487_v1 = vld [vmem:[%s976_s4 + $0x8] sm:$0xff]  ;;  %565 = vmatpush.msrb.mxu2 %v495_v3  ;;  %588 = vmatpush.msrb.mxu3 %v500_v9 }
 0x4a7   :  { %v391_v26 = vsel %vm212_vm15, %v390_v23, 0.0  ;;  %542 = vmatpush.msrb.mxu1 %v487_v1 }
 0x4a8   :  { %v392_v27 = vrot.slane %v391_v26, 4  ;;  %v431_v28 = vrot.slane %v429_v25, 4  ;;  %714 = vpow2.f32 %v668_v37  ;;  %566 = vmatpush.msrb.mxu2 %v494_v8  ;;  %589 = vmatpush.msrb.mxu3 %v499_v10 }
 0x4a9   :  { %543 = vmatpush.msrb.mxu1 %v486_v5 }
 0x4aa   :  { %v393_v29 = vadd.f32 %v392_v27, %v391_v26  ;;  %v433_v30 = vsel %vm212_vm15, %v431_v28, 0.0  ;;  %590 = vmatpush.msrb.mxu3 %v498_v11 }
 0x4ab   :  { %v434_v31 = vrot.slane %v433_v30, 4  ;;  %619 = vmatpush.msra.mxu1 %v602_v19 }
 0x4ac   :  { %v394_v32 = vrot.slane %v393_v29, 2 }
 0x4ad   :  { %v435_v33 = vadd.f32 %v434_v31, %v433_v30  ;;  %620 = vmatpush.msra.mxu1 %v601_v20 }
 0x4ae   :  { %v395_v34 = vadd.f32 %v394_v32, %v393_v29  ;;  %v715_v43 = vpop.eup %714  ;;  %v596_v29 = vld [vmem:[%s977_s5] sm:$0x1]  ;;  %s754_s5 = smov [#allocation4]  }
 0x4af   :  { %v436_v35 = vrot.slane %v435_v33, 2  ;;  %v446_v44 = vadd.f32 1.0, %v715_v43  ;;  %621 = vmatpush.msra.mxu1 %v600_v21  ;;  %s646_s6 = sshll.u32 %s754_s5, 4  ;;  %s647_s6 = int_to_ptr.vmem [resolvable:$true] %s646_s6 }
 0x4b0   :  { %v396_v36 = vrot.slane %v395_v34, 1 }
 0x4b1   :  { %v437_v38 = vadd.f32 %v436_v35, %v435_v33  ;;  %716 = vrcp.f32 %v446_v44  ;;  %v458_v49 = vand.u32 2147483648, %v446_v44  ;;  %vm452_vm1 = vweird.f32 %v446_v44  ;;  %622 = vmatpush.msra.mxu1 %v599_v22  ;;  %v603_v33 = vld [vmem:[%s979_s7] sm:$0x1] }
 0x4b2   :  { %v397_v40 = vadd.f32 %v396_v36, %v395_v34  ;;  %v456_v50 = vand.u32 2147483647, %v446_v44 }
 0x4b3   :  { %v438_v39 = vrot.slane %v437_v38, 1  ;;  %v459_v53 = vor.u32 1.1754944e-38, %v458_v49 }
 0x4b5   :  { %v439_v41 = vadd.f32 %v438_v39, %v437_v38 }
 0x4b7   :  { %v441_v42 = vsel %vm142_vm9, %v397_v40, %v439_v41  ;;  %v717_v45 = vpop.eup %716  ;;  %vm457_vm9 = vcmp.eq.f32.partialorder %v456_v50, 8.507059e+37 }
 0x4b8   :  { %469 = vrot.lane.b32.xlu2 %v441_v42, %s752_s2  ;;  %v448_v46 = vmul.f32 %v717_v45, %v446_v44  ;;  %vm453_vm15 = vweird.f32 %v717_v45 }
 0x4b9   :  { %vm454_vm10 = vmor %vm452_vm1, %vm453_vm15 }
 0x4ba   :  { %v449_v47 = vsub.f32 1.0, %v448_v46 }
 0x4bc   :  { %v450_v48 = vmul.f32 %v717_v45, %v449_v47 }
 0x4be   :  { %v451_v6 = vadd.f32 %v717_v45, %v450_v48 }
 0x4c0   :  { %v455_v51 = vsel %vm454_vm10, %v717_v45, %v451_v6 }
 0x4c1   :  { %v460_v55 = vsel %vm457_vm9, %v459_v53, %v455_v51 }
 0x512   :  { %v465_v54 = vpop.permute.xlu1 %464  ;;  %v470_v57 = vpop.permute.xlu2 %469 }
 0x513   :  { %v467_v56 = vmul.f32 %v465_v54, %v460_v55 }
 0x515   :  { %v472_v58 = vadd.f32 %v470_v57, %v467_v56 }
 0x517   :  { %718 = vtanh.f32 %v472_v58  ;;  %479 = vst.msk [vmem:[#allocation2 + $0x8] sm:$0x3] %vm301_vm5, %v472_v58  ;;  %vm988_vm5 = vcmask 261120  }
 0x518   :  { %vm989_vm0 = vmmov %vm988_vm5 }
 0x519   :  { %vm990_vm11 = vmmov %vm989_vm0 }
 0x51a   :  { %vm991_vm12 = vmmov %vm989_vm0 }
 0x51d   :  { %v719_v52 = vpop.eup %718 }
 0x51e   :  { %475 = vrot.lane.b32.xlu0 %v719_v52, %s752_s2 }
 0x590   :  { %v476_v12 = vpop.permute.xlu0 %475 }
 0x591   :  { %v478_v13 = vmul.f32 %v476_v12, %v460_v55 }
 0x593   :  { %480 = vst.msk [vmem:[#allocation2 + $0x8] sm:$0x3] %vm303_vm6, %v478_v13  ;;  %vm992_vm6 = vmmov %vm989_vm0 }
 0x59a   :  { %v482_v14 = vld [vmem:[#allocation2 + $0x9] sm:$0x1]  ;;  %v481_v15 = vld [vmem:[#allocation2 + $0x8] sm:$0x1] }
 0x59b   :  { %669 = vmatmul.msk.f32.vlgmr.msra.gmra.mxu3 %vm988_vm5, %v482_v14  ;;  %v483_v16 = vmul.f32 %v482_v14, %v481_v15  ;;  %670 = vmatmul.msk.f32.vlgmr.msrb.gmra.mxu1 %vm989_vm0, %v481_v15  ;;  %v484_v17 = vsub.f32 %v481_v15, %v482_v14 }
 0x59d   :  { %671 = vmatmul.msk.f32.vlgmr.msrb.gmra.mxu2 %vm990_vm11, %v483_v16  ;;  %v485_v18 = vand.u32 2147483647, %v484_v17 }
 0x5a3   :  { %672 = vmatmul.msk.f32.vlgmr.msrb.gmra.mxu3 %vm991_vm12, %v485_v18 }
 0x618   :  { %v545_v24 = vpop.f32.mrf.mxu1 }
 0x61e   :  { %v522_v23 = vpop.f32.mrf.mxu3 }
 0x61f   :  { %v546_v25 = vadd.f32 %v545_v24, %v522_v23 }
 0x620   :  { %v568_v26 = vpop.f32.mrf.mxu2 }
 0x621   :  { %v571_v27 = vadd.f32 %v568_v26, %v546_v25 }
 0x626   :  { %v592_v28 = vpop.f32.mrf.mxu3 }
 0x627   :  { %v595_v30 = vadd.f32 %v592_v28, %v571_v27 }
 0x629   :  { %v597_v31 = vadd.f32 %v596_v29, %v595_v30 }
 0x62b   :  { %v598_v32 = vmax.f32 %v597_v31, 0.0 }
 0x62d   :  { %673 = vmatmul.msk.f32.vlgmr.msra.gmra.mxu1 %vm992_vm6, %v598_v32 }
 0x6aa   :  { %v624_v34 = vpop.f32.mrf.mxu1 }
 0x6ab   :  { %v625_v35 = vadd.f32 %v624_v34, %v603_v33 }
 0x6ad   :  { %v628_v36 = vsel %vm627_vm13, %v625_v35, -inf }
 0x6ae   :  { %629 = vmax.xlane.f32.xlu1 %v628_v36 }
 0x721   :  { %v630_v38 = vpop.xlane.xlu1 %629 }
 0x722   :  { %v631_v39 = vsub.f32 %v625_v35, %v630_v38 }
 0x724   :  { %v632_v40 = vmul.f32 1.442695, %v631_v39 }
 0x726   :  { %720 = vpow2.f32 %v632_v40 }
 0x72c   :  { %v721_v41 = vpop.eup %720 }
 0x72d   :  { %v634_v42 = vsel %vm627_vm13, %v721_v41, 0.0 }
 0x72e   :  { %635 = vadd.xlane.f32.xlu2 %v634_v42 }
 0x7a1   :  { %v636_v37 = vpop.xlane.xlu2 %635 }
 0x7a2   :  { %722 = vlog2.f32 %v636_v37 }
 0x7a8   :  { %v723_v43 = vpop.eup %722 }
 0x7a9   :  { %v638_v44 = vmul.f32 0.6931472, %v723_v43 }
 0x7ab   :  { %v639_v45 = vsub.f32 %v631_v39, %v638_v44 }
 0x7ad   :  { %640 = vst.msk [vmem:[#allocation4] sm:$0x1] %vm627_vm13, %v639_v45 }
 0x7ae   :  { %651 = dma.vmem_to_hbm [thread:$0]  %s647_s6, 16, %s649_s22, [#allocation5]  }
 0x7af   :  { %748 = dma.done.wait [#allocation5], 16  }
 0x7b0   :  { %749 = vsyncadd [#allocation5], 4294967280 }
 0x7b1   :  { %656 = vsyncpa [#allocation5], 1 }

</bundles_post_ra>
